<compile_context>
chip_gen: v7x
topology: tpu7x:2x2x1
jax: 0.10.0
libtpu: 0.0.40
codegen_flags: <defaults>
</compile_context>

<pallas_src>
import functools

import jax
import jax.numpy as jnp
from jax.experimental import pallas as pl
from jax.experimental.pallas import tpu as pltpu


def _reward_crit_kernel(logp_ref, seq_ref, reward_ref, part_ref, *, batch, ragged):
    """One batch tile of RewardCriterion partial sums.

    logp_ref   : [T, Bb] log-probs (f32/bf16)  -- time on sublanes, batch on lanes
    seq_ref    : [T, Bb] sampled token ids (any integer dtype)
    reward_ref : [1, Bb] per-sequence reward (f32/bf16) == reward[:, 0] of the module
    part_ref   : [1, 1, 128] f32 output block; lanes 0..2 get (num, den, r0) where
                 num = sum(logp * reward * mask)  (un-negated; negation folded into
                 the XLA epilogue), den = sum(mask), r0 = sum(reward).
    """
    tile_b = logp_ref.shape[1]
    logp = logp_ref[...].astype(jnp.float32)          # upcast if bf16 arrives
    seq = seq_ref[...]
    reward = reward_ref[...].astype(jnp.float32)      # [1, Bb]

    row = jax.lax.broadcasted_iota(jnp.int32, logp.shape, 0)

    if ragged:
        # Columns at global index >= batch are padding of the ragged last tile:
        # zero them out of all three sums (values may be stale VMEM -> use where).
        limit = batch - pl.program_id(0) * tile_b          # scalar, int32
        col = jax.lax.broadcasted_iota(jnp.int32, logp.shape, 1)
        valid = col < limit
        svalid = ((seq > 0) & valid).astype(jnp.float32)
        # mask[t] = (seq[t-1] > 0), mask[0] = 1  (only on valid lanes)
        mask = jnp.where(row == 0, valid.astype(jnp.float32),
                         pltpu.roll(svalid, shift=1, axis=0))
        logp = jnp.where(valid, logp, 0.0)
        col_r = jax.lax.broadcasted_iota(jnp.int32, reward.shape, 1)
        reward = jnp.where(col_r < limit, reward, 0.0)
    else:
        svalid = (seq > 0).astype(jnp.float32)
        mask = jnp.where(row == 0, jnp.float32(1.0),
                         pltpu.roll(svalid, shift=1, axis=0))

    # Reward is constant over time: reduce the time axis first, multiply per column.
    per_col = jnp.sum(logp * mask, axis=0, keepdims=True)     # [1, Bb]
    num = jnp.sum(per_col * reward)                           # sum(logp*reward*mask)
    den = jnp.sum(mask)                                       # sum(mask)
    r0 = jnp.sum(reward)                                      # sum of per-seq reward

    lane = jax.lax.broadcasted_iota(jnp.int32, (1, 128), 1)
    part_ref[0] = jnp.where(
        lane == 0, num,
        jnp.where(lane == 1, den,
                  jnp.where(lane == 2, r0, jnp.float32(0.0))))


def _pick_block_b(batch, seq_len, logp_dtype, seq_dtype, reward_dtype,
                  vmem_budget_bytes=24 * 1024 * 1024, max_block_b=128 * 1024):
    """Largest 128-aligned batch tile whose double-buffered working set fits budget."""
    per_col = 2 * (seq_len * (jnp.dtype(logp_dtype).itemsize +
                              jnp.dtype(seq_dtype).itemsize)
                   + jnp.dtype(reward_dtype).itemsize)
    cols = (vmem_budget_bytes // per_col) // 128 * 128
    cols = max(128, min(int(cols), max_block_b))
    batch_padded = -(-batch // 128) * 128
    return min(cols, batch_padded)


def reward_criterion_pallas(sample_logprobs, gen_result, reward_per_seq, *, block_b=None):
    """Fused RewardCriterion + reward[:, 0].mean().

    sample_logprobs : [T, B] f32/bf16, time-major (emitted natively; no transpose here)
    gen_result      : [T, B] integer token ids
    reward_per_seq  : [B] per-sequence self-critical reward (the original module
                      repeats it across T; that broadcast happens in-kernel).
    Returns (loss, reward_mean) as f32 scalars.
    """
    T, B = sample_logprobs.shape
    assert gen_result.shape == (T, B)
    reward_1b = reward_per_seq.reshape(1, B)

    if block_b is None:
        block_b = _pick_block_b(B, T, sample_logprobs.dtype, gen_result.dtype,
                                reward_1b.dtype)
    assert block_b % 128 == 0
    num_tiles = pl.cdiv(B, block_b)
    ragged = (B % block_b) != 0

    partials = pl.pallas_call(
        functools.partial(_reward_crit_kernel, batch=B, ragged=ragged),
        out_shape=jax.ShapeDtypeStruct((num_tiles, 1, 128), jnp.float32),
        grid_spec=pltpu.PrefetchScalarGridSpec(
            num_scalar_prefetch=0,
            grid=(num_tiles,),
            in_specs=[
                pl.BlockSpec((T, block_b), lambda i: (0, i)),
                pl.BlockSpec((T, block_b), lambda i: (0, i)),
                pl.BlockSpec((1, block_b), lambda i: (0, i)),
            ],
            out_specs=pl.BlockSpec((1, 1, 128), lambda i: (i, 0, 0)),
        ),
        compiler_params=pltpu.CompilerParams(
            # Per-tile partial outputs -> no cross-step state -> safe to mark
            # "parallel" (lets v7x shard tiles across its 2 TensorCores).
            dimension_semantics=("parallel",),
            vmem_limit_bytes=32 * 1024 * 1024,
        ),
    )(sample_logprobs, gen_result, reward_1b)

    sums = jnp.sum(partials[:, 0, :3], axis=0)      # trivial XLA epilogue
    loss = -sums[0] / sums[1]                       # negation folded here
    reward_mean = sums[2] / jnp.float32(B)
    return loss, reward_mean


def _synthetic_rollout(key, batch, seq_len=8):
    """Deterministic stand-ins for model.sample() + get_self_critical_reward().

    Emitted time-major ([T, B]) so the kernel consumes them without any transpose.
    """
    k1, k2, k3 = jax.random.split(key, 3)
    gen_result = jax.random.randint(k1, (seq_len, batch), 0, 5, dtype=jnp.int32)
    sample_logprobs = -jnp.abs(jax.random.normal(k2, (seq_len, batch), dtype=jnp.float32))
    # self-critical reward is one scalar per sequence (the torch code repeats it over T)
    per_seq_reward = jax.random.normal(k3, (batch,), dtype=jnp.float32)
    return gen_result, sample_logprobs, per_seq_reward


def loss_wrapper_forward(feats, gts, key):
    """JAX analogue of LossWrapper.forward.

    # TODO(synk): model.sample(feats, sample_max=0) and get_self_critical_reward(...)
    # are external and undefined in the spec; replaced by deterministic synthetic
    # stand-ins so the RewardCriterion hot path (the Pallas kernel) is exercised.
    """
    del gts
    B = feats.shape[0]
    gen_result, sample_logprobs, per_seq_reward = _synthetic_rollout(key, B)
    loss, reward_mean = reward_criterion_pallas(sample_logprobs, gen_result, per_seq_reward)
    return {"reward": reward_mean, "loss": loss}


def _reference(sample_logprobs_bt, gen_result_bt, reward_bt):
    """Pure-JAX reference of RewardCriterion with the PyTorch [B, T] semantics."""
    B = sample_logprobs_bt.shape[0]
    mask = (gen_result_bt > 0).astype(jnp.float32)
    mask = jnp.concatenate([jnp.ones((B, 1), jnp.float32), mask[:, :-1]], axis=1)
    out = -sample_logprobs_bt * reward_bt * mask
    return jnp.sum(out) / jnp.sum(mask), jnp.mean(reward_bt[:, 0])


if __name__ == "__main__":
    key = jax.random.PRNGKey(0)
    kf, kg, kr, kbig = jax.random.split(key, 4)

    # --- Case 1: module-consistent toy shapes (B=2, C=4, 16x16 feats, T=8) -----
    B, C, H, W = 2, 4, 16, 16
    feats = jax.random.normal(kf, (B, C, H, W), dtype=jnp.float32)
    gts = jax.random.randint(kg, (B, 5, 8), 0, 100, dtype=jnp.int32)

    out = loss_wrapper_forward(feats, gts, kr)
    loss = jax.block_until_ready(out["loss"])
    rmean = jax.block_until_ready(out["reward"])

    gen_tb, logp_tb, r_b = _synthetic_rollout(kr, B)
    T = logp_tb.shape[0]
    ref_loss, ref_rmean = _reference(logp_tb.T, gen_tb.T,
                                     jnp.broadcast_to(r_b[:, None], (B, T)))
    assert jnp.allclose(loss, ref_loss, atol=1e-5, rtol=1e-5), (loss, ref_loss)
    assert jnp.allclose(rmean, ref_rmean, atol=1e-5, rtol=1e-5), (rmean, ref_rmean)

    # --- Case 2: multi-tile grid with a ragged last tile (B=600, block_b=256) --
    B2, T2 = 600, 8
    gen2, logp2, r2 = _synthetic_rollout(kbig, B2, T2)
    loss2, rmean2 = reward_criterion_pallas(logp2, gen2, r2, block_b=256)
    loss2 = jax.block_until_ready(loss2)
    rmean2 = jax.block_until_ready(rmean2)
    ref_loss2, ref_rmean2 = _reference(logp2.T, gen2.T,
                                       jnp.broadcast_to(r2[:, None], (B2, T2)))
    assert jnp.allclose(loss2, ref_loss2, atol=1e-4, rtol=1e-4), (loss2, ref_loss2)
    assert jnp.allclose(rmean2, ref_rmean2, atol=1e-5, rtol=1e-5), (rmean2, ref_rmean2)

    print("KERNEL_OK")
</pallas_src>

<mosaic_0001>
module attributes {stable_mosaic.version = 11 : i64} {
  func.func @_reward_crit_kernel(%arg0: i32, %arg1: memref<8x128xf32, #tpu.memory_space<vmem>>, %arg2: memref<8x128xi32, #tpu.memory_space<vmem>>, %arg3: memref<1x128xf32, #tpu.memory_space<vmem>>, %arg4: memref<1x1x128xf32, #tpu.memory_space<vmem>>) attributes {dimension_semantics = [#tpu.dimension_semantics<parallel>], iteration_bounds = array<i64: 1>, scalar_prefetch = 0 : i64, scratch_operands = 0 : i64, tpu.core_type = #tpu.core_type<tc>, window_params = [{transform_indices = @transform_0, window_bounds = array<i64: 8, 128>}, {transform_indices = @transform_1, window_bounds = array<i64: 8, 128>}, {transform_indices = @transform_2, window_bounds = array<i64: 1, 128>}, {transform_indices = @transform_3, window_bounds = array<i64: 1, 1, 128>}]} {
    %c0 = arith.constant 0 : index
    %c0_0 = arith.constant 0 : index
    %0 = vector.load %arg1[%c0, %c0_0] : memref<8x128xf32, #tpu.memory_space<vmem>>, vector<8x128xf32>
    %c0_1 = arith.constant 0 : index
    %c0_2 = arith.constant 0 : index
    %1 = vector.load %arg2[%c0_1, %c0_2] : memref<8x128xi32, #tpu.memory_space<vmem>>, vector<8x128xi32>
    %c0_3 = arith.constant 0 : index
    %c0_4 = arith.constant 0 : index
    %2 = vector.load %arg3[%c0_3, %c0_4] : memref<1x128xf32, #tpu.memory_space<vmem>>, vector<1x128xf32>
    %3 = tpu.iota {dimensions = array<i32: 0>} : vector<8x128xi32>
    %c128_i32 = arith.constant 128 : i32
    %4 = arith.muli %arg0, %c128_i32 : i32
    %c2_i32 = arith.constant 2 : i32
    %5 = arith.subi %c2_i32, %4 : i32
    %6 = tpu.iota {dimensions = array<i32: 1>} : vector<8x128xi32>
    %7 = vector.broadcast %5 : i32 to vector<8x128xi32>
    %8 = arith.cmpi slt, %6, %7 : vector<8x128xi32>
    %c0_i32 = arith.constant 0 : i32
    %9 = vector.broadcast %c0_i32 : i32 to vector<8x128xi32>
    %10 = arith.cmpi sgt, %1, %9 : vector<8x128xi32>
    %11 = arith.andi %10, %8 : vector<8x128xi1>
    %12 = arith.extui %11 : vector<8x128xi1> to vector<8x128xi32>
    %13 = arith.sitofp %12 : vector<8x128xi32> to vector<8x128xf32>
    %c0_i32_5 = arith.constant 0 : i32
    %14 = vector.broadcast %c0_i32_5 : i32 to vector<8x128xi32>
    %15 = arith.cmpi eq, %3, %14 : vector<8x128xi32>
    %16 = arith.extui %8 : vector<8x128xi1> to vector<8x128xi32>
    %17 = arith.sitofp %16 : vector<8x128xi32> to vector<8x128xf32>
    %c1_i32 = arith.constant 1 : i32
    %18 = tpu.dynamic_rotate %13 by %c1_i32 dim 0 : vector<8x128xf32>, i32 -> vector<8x128xf32>
    %19 = arith.select %15, %17, %18 : vector<8x128xi1>, vector<8x128xf32>
    %cst = arith.constant 0.000000e+00 : f32
    %20 = vector.broadcast %cst : f32 to vector<8x128xf32>
    %21 = arith.select %8, %0, %20 : vector<8x128xi1>, vector<8x128xf32>
    %22 = tpu.iota {dimensions = array<i32: 1>} : vector<1x128xi32>
    %23 = vector.broadcast %5 : i32 to vector<1x128xi32>
    %24 = arith.cmpi slt, %22, %23 : vector<1x128xi32>
    %cst_6 = arith.constant 0.000000e+00 : f32
    %25 = vector.broadcast %cst_6 : f32 to vector<1x128xf32>
    %26 = arith.select %24, %2, %25 : vector<1x128xi1>, vector<1x128xf32>
    %27 = arith.mulf %21, %19 : vector<8x128xf32>
    %cst_7 = arith.constant dense<0.000000e+00> : vector<128xf32>
    %28 = vector.multi_reduction <add>, %27, %cst_7 [0] : vector<8x128xf32> to vector<128xf32>
    %29 = vector.shape_cast %28 : vector<128xf32> to vector<1x128xf32>
    %30 = arith.mulf %29, %26 : vector<1x128xf32>
    %31 = vector.shape_cast %30 : vector<1x128xf32> to vector<1x1x128xf32>
    %cst_8 = arith.constant dense<0.000000e+00> : vector<1xf32>
    %32 = vector.multi_reduction <add>, %31, %cst_8 [1, 2] : vector<1x1x128xf32> to vector<1xf32>
    %33 = vector.shape_cast %32 : vector<1xf32> to vector<1x1x1xf32>
    %34 = vector.extract %33[0, 0, 0] : f32 from vector<1x1x1xf32>
    %35 = vector.shape_cast %19 : vector<8x128xf32> to vector<1x8x128xf32>
    %cst_9 = arith.constant dense<0.000000e+00> : vector<1xf32>
    %36 = vector.multi_reduction <add>, %35, %cst_9 [1, 2] : vector<1x8x128xf32> to vector<1xf32>
    %37 = vector.shape_cast %36 : vector<1xf32> to vector<1x1x1xf32>
    %38 = vector.extract %37[0, 0, 0] : f32 from vector<1x1x1xf32>
    %39 = vector.shape_cast %26 : vector<1x128xf32> to vector<1x1x128xf32>
    %cst_10 = arith.constant dense<0.000000e+00> : vector<1xf32>
    %40 = vector.multi_reduction <add>, %39, %cst_10 [1, 2] : vector<1x1x128xf32> to vector<1xf32>
    %41 = vector.shape_cast %40 : vector<1xf32> to vector<1x1x1xf32>
    %42 = vector.extract %41[0, 0, 0] : f32 from vector<1x1x1xf32>
    %43 = tpu.iota {dimensions = array<i32: 1>} : vector<1x128xi32>
    %c0_i32_11 = arith.constant 0 : i32
    %44 = vector.broadcast %c0_i32_11 : i32 to vector<1x128xi32>
    %45 = arith.cmpi eq, %43, %44 : vector<1x128xi32>
    %c1_i32_12 = arith.constant 1 : i32
    %46 = vector.broadcast %c1_i32_12 : i32 to vector<1x128xi32>
    %47 = arith.cmpi eq, %43, %46 : vector<1x128xi32>
    %c2_i32_13 = arith.constant 2 : i32
    %48 = vector.broadcast %c2_i32_13 : i32 to vector<1x128xi32>
    %49 = arith.cmpi eq, %43, %48 : vector<1x128xi32>
    %cst_14 = arith.constant 0.000000e+00 : f32
    %50 = vector.broadcast %42 : f32 to vector<1x128xf32>
    %51 = vector.broadcast %cst_14 : f32 to vector<1x128xf32>
    %52 = arith.select %49, %50, %51 : vector<1x128xi1>, vector<1x128xf32>
    %53 = vector.broadcast %38 : f32 to vector<1x128xf32>
    %54 = arith.select %47, %53, %52 : vector<1x128xi1>, vector<1x128xf32>
    %55 = vector.broadcast %34 : f32 to vector<1x128xf32>
    %56 = arith.select %45, %55, %54 : vector<1x128xi1>, vector<1x128xf32>
    %c0_15 = arith.constant 0 : index
    %c0_16 = arith.constant 0 : index
    %c0_17 = arith.constant 0 : index
    %57 = vector.load %arg4[%c0_15, %c0_16, %c0_17] : memref<1x1x128xf32, #tpu.memory_space<vmem>>, vector<1x1x128xf32>
    %58 = vector.shape_cast %57 : vector<1x1x128xf32> to vector<1x128xf32>
    %59 = vector.shape_cast %56 : vector<1x128xf32> to vector<1x1x128xf32>
    tpu.vector_store %arg4[%c0_15, %c0_16, %c0_17], %59 {strides = array<i32>} : memref<1x1x128xf32, #tpu.memory_space<vmem>>, vector<1x1x128xf32>,
    return
  }
  func.func @transform_0(%arg0: i32) -> (i32, i32) {
    %c0_i32 = arith.constant 0 : i32
    %c0_i32_0 = arith.constant 0 : i32
    return %c0_i32, %arg0 : i32, i32
  }
  func.func @transform_1(%arg0: i32) -> (i32, i32) {
    %c0_i32 = arith.constant 0 : i32
    %c0_i32_0 = arith.constant 0 : i32
    return %c0_i32, %arg0 : i32, i32
  }
  func.func @transform_2(%arg0: i32) -> (i32, i32) {
    %c0_i32 = arith.constant 0 : i32
    %c0_i32_0 = arith.constant 0 : i32
    return %c0_i32, %arg0 : i32, i32
  }
  func.func @transform_3(%arg0: i32) -> (i32, i32, i32) {
    %c0_i32 = arith.constant 0 : i32
    %c0_i32_0 = arith.constant 0 : i32
    %c0_i32_1 = arith.constant 0 : i32
    return %arg0, %c0_i32, %c0_i32_0 : i32, i32, i32
  }
}

</mosaic_0001>

<bundles_post_ra>
// kernel: tpu_custom_call.1
= control target key start
LH: loop header
LB: loop body
LE: loop exit
PB: predicated region body
PF: predicated region fallthrough
CT: control target
= control target key end

     0   :  { %v18_v0 = vlaneseq  ;;  %s184_s0 = inlined_call_operand.vmem [shape: f32[8,2], index: 0, kind: input, shape index: {}]   ;;  %s185_s1 = inlined_call_operand.vmem [shape: s32[8,2], index: 1, kind: input, shape index: {}]   ;;  %s186_s2 = inlined_call_operand.vmem [shape: f32[1,2], index: 2, kind: input, shape index: {}]   ;;  %s187_s3 = inlined_call_operand.hbm [shape: f32[1,1,128], index: 3, kind: output, shape index: {}]  }
   0x1   :  { %v16_v1 = vld [vmem:[%s185_s1] sm:$0xff] }
   0x2   :  { %8 = vsyncpa [#allocation3], 0  ;;  %v17_v2 = vld [vmem:[%s186_s2] sm:$0x1]  ;;  %v161_v3 = vand.u32 127, %v18_v0  ;;  %vm26_vm0 = vcmp.gt.s32.totalorder %v16_v1, 0 }
   0x3   :  { %v19_v4 = vshrl.u32 %v18_v0, 7  ;;  %vm45_vm1 = vcmask 1040384   ;;  %v15_v5 = vld [vmem:[%s184_s0] sm:$0xff]  ;;  %v133_v7 = vmov 0.0   ;;  %s134_s18 = smov [#allocation2]  }
   0x4   :  { %vm25_vm2 = vcmp.lt.s32.totalorder %v161_v3, 2  ;;  %vm77_vm5 = vcmp.eq.s32.totalorder %v161_v3, 2  ;;  %vm76_vm6 = vcmp.eq.s32.totalorder %v161_v3, 1  ;;  %s91_s19 = sshll.u32 %s134_s18, 4  ;;  %vm75_vm7 = vcmp.eq.s32.totalorder %v161_v3, 0  ;;  %s92_s19 = int_to_ptr.vmem [resolvable:$true] %s91_s19 }
   0x5   :  { %v36_v6 = vsel %vm25_vm2, %v17_v2, 0.0  ;;  %vm27_vm3 = vmand %vm26_vm0, %vm25_vm2  ;;  %v100_v8 = vsel %vm25_vm2, 1.0, %v133_v7  ;;  %vm30_vm4 = vcmp.eq.s32.totalorder %v19_v4, 0  ;;  %v35_v12 = vsel %vm25_vm2, %v15_v5, 0.0  ;;  %s109_s20 = scalar_lea.vmem %s92_s19, 16  ;;  %s113_s21 = scalar_lea.vmem %s92_s19, 32 }
   0x6   :  { %v65_v9 = vsel %vm45_vm1, %v36_v6, 0.0  ;;  %v99_v10 = vsel %vm27_vm3, 1.0, %v133_v7  ;;  %p110_p0 = scmp.ne.s32.totalorder %s92_s19, %s109_s20  ;;  %p114_p1 = scmp.lt.s32.totalorder %s92_s19, %s92_s19 }
   0x7   :  { %66 = vadd.xlane.f32.xlu1 %v65_v9  ;;  %v33_v11 = vrot.slane %v99_v10, 7  ;;  %p115_p2 = scmp.lt.s32.totalorder %s113_s21, %s109_s20 }
   0x9   :  { %v34_v13 = vsel %vm30_vm4, %v100_v8, %v33_v11  ;;  %p116_p3 = por %p115_p2, %p114_p1 }
   0xa   :  { %v37_v14 = vmul.f32 %v35_v12, %v34_v13 }
   0xb   :  { %p117_p4 = pnand %p116_p3, %p110_p0 }
   0xc   :  { %v38_v15 = vrot.slane %v37_v14, 4 }
   0xe   :  { %v39_v16 = vadd.f32 %v38_v15, %v37_v14 }
  0x10   :  { %v40_v17 = vrot.slane %v39_v16, 2 }
  0x12   :  { %v41_v18 = vadd.f32 %v40_v17, %v39_v16 }
  0x14   :  { %v42_v19 = vrot.slane %v41_v18, 1 }
  0x16   :  { %v43_v20 = vadd.f32 %v42_v19, %v41_v18 }
  0x18   :  { %v44_v21 = vmul.f32 %v43_v20, %v36_v6 }
  0x1a   :  { %v46_v22 = vsel %vm45_vm1, %v44_v21, 0.0 }
  0x1b   :  { %47 = vadd.xlane.f32.xlu0 %v46_v22 }
  0x1f   :  { %56 = vadd.xlane.f32.xlu0 %v34_v13 }
  0x94   :  { %v67_v23 = vpop.xlane.xlu1 %66 }
  0x95   :  { %v68_v24 = vrot.slane %v67_v23, 4 }
  0x97   :  { %v69_v25 = vadd.f32 %v68_v24, %v67_v23 }
  0x99   :  { %v70_v29 = vrot.slane %v69_v25, 2 }
  0x9b   :  { %v71_v35 = vadd.f32 %v70_v29, %v69_v25 }
  0x9d   :  { %v72_v40 = vrot.slane %v71_v35, 1 }
  0x9f   :  { %v73_v43 = vadd.f32 %v72_v40, %v71_v35 }
  0xa8   :  { %v48_v26 = vpop.xlane.xlu0 %47 }
  0xa9   :  { %v49_v27 = vrot.slane %v48_v26, 4 }
  0xab   :  { %v50_v28 = vadd.f32 %v49_v27, %v48_v26 }
  0xac   :  { %v57_v30 = vpop.xlane.xlu0 %56 }
  0xad   :  { %v51_v31 = vrot.slane %v50_v28, 2  ;;  %v58_v32 = vrot.slane %v57_v30, 4 }
  0xaf   :  { %v59_v33 = vadd.f32 %v58_v32, %v57_v30  ;;  %v52_v34 = vadd.f32 %v51_v31, %v50_v28 }
  0xb1   :  { %v60_v36 = vrot.slane %v59_v33, 2  ;;  %v53_v37 = vrot.slane %v52_v34, 1 }
  0xb3   :  { %v61_v38 = vadd.f32 %v60_v36, %v59_v33  ;;  %v54_v39 = vadd.f32 %v53_v37, %v52_v34 }
  0xb5   :  { %101 = vpush %v54_v39  ;;  %v62_v41 = vrot.slane %v61_v38, 1 }
  0xb7   :  { %v63_v42 = vadd.f32 %v62_v41, %v61_v38 }
  0xb9   :  { %103 = vpush %v63_v42 }
  0xba   :  { %105 = vpush %v73_v43 }
  0xe6   :  { %s102_s0 = spop %101 }
  0xe7   :  { %v82_v47 = vstv %s102_s0 }
  0xea   :  { %s104_s1 = spop %103 }
  0xeb   :  { %v80_v44 = vstv %s104_s1  ;;  %s106_s2 = spop %105 }
  0xec   :  { %v78_v45 = vstv %s106_s2 }
  0xed   :  { %v79_v46 = vsel %vm77_vm5, %v78_v45, 0.0 }
  0xee   :  { %v81_v48 = vsel %vm76_vm6, %v80_v44, %v79_v46 }
  0xef   :  { %v83_v49 = vsel %vm75_vm7, %v82_v47, %v81_v48 }
  0xf0   :  { %84 = vst [vmem:[#allocation2] sm:$0x1] %v83_v49 }
  0xf1   :  { %120 = shalt.err (!%p117_p4)
}
  0xf2   :  { %s121_s24 = scalar_lea.hbm %s187_s3, 16 }
  0xf3   :  { %p122_p5 = scmp.ne.s32.totalorder %s187_s3, %s121_s24  ;;  %p125_p6 = scmp.lt.u32.totalorder %s121_s24, %s187_s3 }
  0xf5   :  { %p127_p7 = pnand %p125_p6, %p122_p5 }
  0xf7   :  { %130 = shalt.err (!%p127_p7)
}
  0xf8   :  { %94 = dma.vmem_to_hbm [thread:$0]  %s92_s19, 16, %s187_s3, [#allocation3]  }
  0xf9   :  { %131 = dma.done.wait [#allocation3], 16  }
  0xfa   :  { %132 = vsyncadd [#allocation3], 4294967280 }
  0xfb   :  { %98 = vsyncpa [#allocation3], 1 }

</bundles_post_ra>
